<compile_context>
chip_gen: v7x
topology: tpu7x:2x2x1
jax: 0.10.0
libtpu: 0.0.40
codegen_flags: <defaults>
</compile_context>

<pallas_src>
import functools

import jax
import jax.numpy as jnp
from jax import lax
from jax.experimental import pallas as pl
from jax.experimental.pallas import tpu as pltpu

_BN_EPS = 1e-5
_VMEM_LIMIT = 32 * 1024 * 1024  # safe on v5e/v6e/v7x; the kernel needs far less


def _round_up(x, m):
    return (x + m - 1) // m * m


def _leaky_relu(x, slope=0.2):
    return jnp.where(x > 0, x, slope * x)


def _hidden(x, w1, b1, w2, c_in):
    """Layers 1+2 on one pixel tile: conv1(bias) + LeakyReLU, then conv2."""
    # Layer 1: contraction dim c_in is tiny (e.g. 4) -> keep it off the MXU and
    # do unrolled broadcast FMAs on the VPU.
    acc = x[:, 0:1] * w1[0:1, :]
    for k in range(1, c_in):
        acc = acc + x[:, k:k + 1] * w1[k:k + 1, :]
    h1 = _leaky_relu(acc + b1)
    # Layer 2: (TM, ndf) @ (ndf, 2*ndf) on the MXU, f32 accumulation.
    # TODO(synk): on v5e, casting h1/w2 to bf16 here would halve MXU cost at a
    # small accuracy cost (BN re-normalizes the result).
    return jnp.dot(h1, w2, preferred_element_type=jnp.float32)


def _stats_kernel(x_ref, w1_ref, b1_ref, w2_ref, sum_ref, sumsq_ref, *,
                  tile_m, total_m, padded_m, c_in, inner_tiles):
    """Pass 1: accumulate per-channel sum / sum-of-squares of h2 (per partial)."""
    i = pl.program_id(1)

    @pl.when(i == 0)
    def _():
        sum_ref[...] = jnp.zeros_like(sum_ref)
        sumsq_ref[...] = jnp.zeros_like(sumsq_ref)

    h2 = _hidden(x_ref[...], w1_ref[...], b1_ref[...], w2_ref[...], c_in)

    if total_m != padded_m:  # mask padded rows out of the batch statistics
        tile = pl.program_id(0) * inner_tiles + i
        row = tile * tile_m + lax.broadcasted_iota(jnp.int32, (tile_m, 1), 0)
        h2 = jnp.where(row < total_m, h2, 0.0)

    sum_ref[0] = sum_ref[0] + jnp.sum(h2, axis=0, keepdims=True)
    sumsq_ref[0] = sumsq_ref[0] + jnp.sum(h2 * h2, axis=0, keepdims=True)


def _fwd_kernel(x_ref, w1_ref, b1_ref, w2s_ref, shift_ref, w3p_ref, out_ref, *,
                c_in):
    """Pass 2: recompute h1/h2 (BN scale folded into w2), shift + LeakyReLU + layer 3."""
    h2n = _leaky_relu(
        _hidden(x_ref[...], w1_ref[...], b1_ref[...], w2s_ref[...], c_in)
        + shift_ref[...])
    # Layer 3 as w3 @ h2n^T so the pixel axis lands on lanes: lane-dense
    # (1, TM) logits row instead of a masked (TM, 1) column store.
    logits = lax.dot_general(
        w3p_ref[...], h2n,
        dimension_numbers=(((1,), (1,)), ((), ())),
        preferred_element_type=jnp.float32)          # (8, TM); row 0 is real
    out_ref[0] = logits[0:1, :]


def pixeldnet_forward_nhwc(x_nhwc, w1, b1, w2, gamma, beta, w3, *,
                           tile_m=4096, bn_partials=2):
    """x_nhwc: (N, H, W, C_in) float32 -> (N, H, W, 1) float32."""
    N, H, W, C_in = x_nhwc.shape
    ndf = w1.shape[1]
    C2 = w2.shape[1]
    M = N * H * W

    x_flat = x_nhwc.reshape(M, C_in)

    # Tile the pixel axis; pad so the grid covers it exactly (padded rows are
    # masked out of the BN statistics and sliced off the output).
    TM = min(_round_up(tile_m, 128), _round_up(M, 128))
    num_tiles = pl.cdiv(M, TM)
    P = max(1, min(bn_partials, num_tiles))     # BN partial accumulators
    inner = pl.cdiv(num_tiles, P)
    num_tiles = inner * P
    M_pad = num_tiles * TM
    if M_pad != M:
        x_flat = jnp.pad(x_flat, ((0, M_pad - M), (0, 0)))

    # w3 as a lane-major row, zero-padded to 8 sublanes for the (8, C2) matmul.
    w3_row = w3.reshape(1, C2)
    w3p = jnp.concatenate([w3_row, jnp.zeros((7, C2), w3.dtype)], axis=0)

    # ---- pass 1: global BatchNorm statistics over all N*H*W pixels ----
    s1p, s2p = pl.pallas_call(
        functools.partial(_stats_kernel, tile_m=TM, total_m=M, padded_m=M_pad,
                          c_in=C_in, inner_tiles=inner),
        grid=(P, inner),
        in_specs=[
            pl.BlockSpec((TM, C_in), lambda p, i: (p * inner + i, 0)),
            pl.BlockSpec((C_in, ndf), lambda p, i: (0, 0)),
            pl.BlockSpec((1, ndf), lambda p, i: (0, 0)),
            pl.BlockSpec((ndf, C2), lambda p, i: (0, 0)),
        ],
        out_specs=(pl.BlockSpec((1, 1, C2), lambda p, i: (p, 0, 0)),
                   pl.BlockSpec((1, 1, C2), lambda p, i: (p, 0, 0))),
        out_shape=(jax.ShapeDtypeStruct((P, 1, C2), jnp.float32),
                   jax.ShapeDtypeStruct((P, 1, C2), jnp.float32)),
        compiler_params=pltpu.CompilerParams(
            dimension_semantics=("parallel", "arbitrary"),
            vmem_limit_bytes=_VMEM_LIMIT),
    )(x_flat, w1, b1, w2)

    s1 = jnp.sum(s1p[:, 0, :], axis=0, keepdims=True)
    s2 = jnp.sum(s2p[:, 0, :], axis=0, keepdims=True)

    # Fold BN (training mode: biased variance, eps=1e-5) + affine into a
    # per-channel scale/shift; fold the scale directly into conv2's weights.
    # TODO(synk): f32 E[x^2]-E[x]^2 can lose precision for very large M /
    # activations; switch to a Welford-style per-tile combine if needed.
    mean = s1 / M
    var = jnp.maximum(s2 / M - mean * mean, 0.0)
    inv = lax.rsqrt(var + _BN_EPS)
    scale = gamma * inv                      # (1, C2)
    shift = beta - mean * scale              # (1, C2)
    w2s = w2 * scale                         # (ndf, C2): BN scale folded in

    # ---- pass 2: normalize + LeakyReLU + layer 3, lane-dense logits ----
    out = pl.pallas_call(
        functools.partial(_fwd_kernel, c_in=C_in),
        grid=(num_tiles,),
        in_specs=[
            pl.BlockSpec((TM, C_in), lambda i: (i, 0)),
            pl.BlockSpec((C_in, ndf), lambda i: (0, 0)),
            pl.BlockSpec((1, ndf), lambda i: (0, 0)),
            pl.BlockSpec((ndf, C2), lambda i: (0, 0)),
            pl.BlockSpec((1, C2), lambda i: (0, 0)),
            pl.BlockSpec((8, C2), lambda i: (0, 0)),
        ],
        out_specs=pl.BlockSpec((1, 1, TM), lambda i: (i, 0, 0)),
        out_shape=jax.ShapeDtypeStruct((num_tiles, 1, TM), jnp.float32),
        compiler_params=pltpu.CompilerParams(
            dimension_semantics=("parallel",),   # sharded across TCs on v7x
            vmem_limit_bytes=_VMEM_LIMIT),
    )(x_flat, w1, b1, w2s, shift, w3p)

    return out.reshape(M_pad)[:M].reshape(N, H, W, 1)


def pixeldnet_forward(x_nchw, w1, b1, w2, gamma, beta, w3, *, tile_m=4096,
                      bn_partials=2):
    """PyTorch-convention entry point: (N, C_in, H, W) -> (N, 1, H, W).

    Prefer `pixeldnet_forward_nhwc` if the data is already channels-last; the
    two transposes here are extra full-tensor HBM round trips outside the
    kernels.
    """
    x_nhwc = jnp.transpose(x_nchw, (0, 2, 3, 1))
    out_nhwc = pixeldnet_forward_nhwc(x_nhwc, w1, b1, w2, gamma, beta, w3,
                                      tile_m=tile_m, bn_partials=bn_partials)
    return jnp.transpose(out_nhwc, (0, 3, 1, 2))


def init_params(key, inp_nc, ndf):
    """Deterministic parameter init (synthetic weights, not a checkpoint)."""
    k1, k2, k3, k4 = jax.random.split(key, 4)
    # 1x1 conv weights stored as (C_in, C_out) matmul matrices.
    w1 = jax.random.normal(k1, (inp_nc, ndf), jnp.float32) * 0.1
    b1 = jax.random.normal(k2, (1, ndf), jnp.float32) * 0.1
    w2 = jax.random.normal(k3, (ndf, 2 * ndf), jnp.float32) * 0.1
    # BatchNorm2d default affine init: gamma=1, beta=0.
    gamma = jnp.ones((1, 2 * ndf), jnp.float32)
    beta = jnp.zeros((1, 2 * ndf), jnp.float32)
    w3 = jax.random.normal(k4, (2 * ndf, 1), jnp.float32) * 0.1
    return w1, b1, w2, gamma, beta, w3


def _reference(x_nchw, w1, b1, w2, gamma, beta, w3):
    """Pure-JAX reference of the PyTorch forward (for a sanity check)."""
    hi = jax.lax.Precision.HIGHEST
    N, C, H, W = x_nchw.shape
    x = jnp.transpose(x_nchw, (0, 2, 3, 1)).reshape(-1, C)
    h1 = _leaky_relu(jnp.dot(x, w1, precision=hi) + b1)
    h2 = jnp.dot(h1, w2, precision=hi)
    mean = jnp.mean(h2, axis=0, keepdims=True)
    var = jnp.mean(jnp.square(h2 - mean), axis=0, keepdims=True)
    h2n = _leaky_relu((h2 - mean) * lax.rsqrt(var + _BN_EPS) * gamma + beta)
    out = jnp.dot(h2n, w3, precision=hi)
    return jnp.transpose(out.reshape(N, H, W, 1), (0, 3, 1, 2))


if __name__ == "__main__":
    key = jax.random.PRNGKey(0)
    k_x, k_p = jax.random.split(key)

    # Small shapes: batch=2, inp_nc=4, spatial=16x16, cfg.ndf=32
    N, inp_nc, H, W = 2, 4, 16, 16
    ndf = 32

    x = jax.random.normal(k_x, (N, inp_nc, H, W), jnp.float32)
    params = init_params(k_p, inp_nc, ndf)

    # tile_m=128 so the M=512 toy case actually exercises the multi-tile grid,
    # both BN partial accumulators, and the lane-dense tiled output path.
    out = pixeldnet_forward(x, *params, tile_m=128, bn_partials=2)
    jax.block_until_ready(out)

    assert out.shape == (N, 1, H, W), out.shape

    ref = _reference(x, *params)
    max_err = float(jnp.max(jnp.abs(out - ref)))
    assert max_err < 2e-2, f"max abs err vs reference: {max_err}"

    print("KERNEL_OK")
</pallas_src>

<mosaic_0001>
module attributes {stable_mosaic.version = 11 : i64} {
  func.func @_stats_kernel(%arg0: i32, %arg1: i32, %arg2: memref<128x4xf32, #tpu.memory_space<vmem>>, %arg3: memref<4x32xf32, #tpu.memory_space<vmem>>, %arg4: memref<1x32xf32, #tpu.memory_space<vmem>>, %arg5: memref<32x64xf32, #tpu.memory_space<vmem>>, %arg6: memref<1x1x64xf32, #tpu.memory_space<vmem>>, %arg7: memref<1x1x64xf32, #tpu.memory_space<vmem>>) attributes {dimension_semantics = [#tpu.dimension_semantics<parallel>, #tpu.dimension_semantics<arbitrary>], iteration_bounds = array<i64: 2, 2>, scalar_prefetch = 0 : i64, scratch_operands = 0 : i64, tpu.core_type = #tpu.core_type<tc>, window_params = [{transform_indices = @transform_0, window_bounds = array<i64: 128, 4>}, {pipeline_mode = #tpu.pipeline_mode<synchronous>, transform_indices = @transform_1, window_bounds = array<i64: 4, 32>}, {pipeline_mode = #tpu.pipeline_mode<synchronous>, transform_indices = @transform_2, window_bounds = array<i64: 1, 32>}, {pipeline_mode = #tpu.pipeline_mode<synchronous>, transform_indices = @transform_3, window_bounds = array<i64: 32, 64>}, {transform_indices = @transform_4, window_bounds = array<i64: 1, 1, 64>}, {transform_indices = @transform_5, window_bounds = array<i64: 1, 1, 64>}]} {
    %c0_i32 = arith.constant 0 : i32
    %0 = arith.cmpi eq, %arg1, %c0_i32 : i32
    %1 = arith.extui %0 : i1 to i32
    %c0_i32_0 = arith.constant 0 : i32
    %2 = arith.cmpi ne, %1, %c0_i32_0 : i32
    scf.if %2 {
      %cst_24 = arith.constant 0.000000e+00 : f32
      %55 = vector.broadcast %cst_24 : f32 to vector<1x1x64xf32>
      %c0_25 = arith.constant 0 : index
      %c0_26 = arith.constant 0 : index
      %c0_27 = arith.constant 0 : index
      %56 = vector.load %arg6[%c0_25, %c0_26, %c0_27] : memref<1x1x64xf32, #tpu.memory_space<vmem>>, vector<1x1x64xf32>
      tpu.vector_store %arg6[%c0_25, %c0_26, %c0_27], %55 {strides = array<i32>} : memref<1x1x64xf32, #tpu.memory_space<vmem>>, vector<1x1x64xf32>,
      %cst_28 = arith.constant 0.000000e+00 : f32
      %57 = vector.broadcast %cst_28 : f32 to vector<1x1x64xf32>
      %c0_29 = arith.constant 0 : index
      %c0_30 = arith.constant 0 : index
      %c0_31 = arith.constant 0 : index
      %58 = vector.load %arg7[%c0_29, %c0_30, %c0_31] : memref<1x1x64xf32, #tpu.memory_space<vmem>>, vector<1x1x64xf32>
      tpu.vector_store %arg7[%c0_29, %c0_30, %c0_31], %57 {strides = array<i32>} : memref<1x1x64xf32, #tpu.memory_space<vmem>>, vector<1x1x64xf32>,
    } else {
    }
    %c0 = arith.constant 0 : index
    %c0_1 = arith.constant 0 : index
    %3 = vector.load %arg2[%c0, %c0_1] : memref<128x4xf32, #tpu.memory_space<vmem>>, vector<128x4xf32>
    %c0_2 = arith.constant 0 : index
    %c0_3 = arith.constant 0 : index
    %4 = vector.load %arg3[%c0_2, %c0_3] : memref<4x32xf32, #tpu.memory_space<vmem>>, vector<4x32xf32>
    %c0_4 = arith.constant 0 : index
    %c0_5 = arith.constant 0 : index
    %5 = vector.load %arg4[%c0_4, %c0_5] : memref<1x32xf32, #tpu.memory_space<vmem>>, vector<1x32xf32>
    %c0_6 = arith.constant 0 : index
    %c0_7 = arith.constant 0 : index
    %6 = vector.load %arg5[%c0_6, %c0_7] : memref<32x64xf32, #tpu.memory_space<vmem>>, vector<32x64xf32>
    %7 = vector.extract_strided_slice %3 {offsets = [0, 0], sizes = [128, 1], strides = [1, 1]} : vector<128x4xf32> to vector<128x1xf32>
    %8 = vector.extract_strided_slice %4 {offsets = [0, 0], sizes = [1, 32], strides = [1, 1]} : vector<4x32xf32> to vector<1x32xf32>
    %9 = vector.broadcast %7 : vector<128x1xf32> to vector<128x32xf32>
    %10 = vector.broadcast %8 : vector<1x32xf32> to vector<128x32xf32>
    %11 = arith.mulf %9, %10 : vector<128x32xf32>
    %12 = vector.extract_strided_slice %3 {offsets = [0, 1], sizes = [128, 1], strides = [1, 1]} : vector<128x4xf32> to vector<128x1xf32>
    %13 = vector.extract_strided_slice %4 {offsets = [1, 0], sizes = [1, 32], strides = [1, 1]} : vector<4x32xf32> to vector<1x32xf32>
    %14 = vector.broadcast %12 : vector<128x1xf32> to vector<128x32xf32>
    %15 = vector.broadcast %13 : vector<1x32xf32> to vector<128x32xf32>
    %16 = arith.mulf %14, %15 : vector<128x32xf32>
    %17 = arith.addf %11, %16 : vector<128x32xf32>
    %18 = vector.extract_strided_slice %3 {offsets = [0, 2], sizes = [128, 1], strides = [1, 1]} : vector<128x4xf32> to vector<128x1xf32>
    %19 = vector.extract_strided_slice %4 {offsets = [2, 0], sizes = [1, 32], strides = [1, 1]} : vector<4x32xf32> to vector<1x32xf32>
    %20 = vector.broadcast %18 : vector<128x1xf32> to vector<128x32xf32>
    %21 = vector.broadcast %19 : vector<1x32xf32> to vector<128x32xf32>
    %22 = arith.mulf %20, %21 : vector<128x32xf32>
    %23 = arith.addf %17, %22 : vector<128x32xf32>
    %24 = vector.extract_strided_slice %3 {offsets = [0, 3], sizes = [128, 1], strides = [1, 1]} : vector<128x4xf32> to vector<128x1xf32>
    %25 = vector.extract_strided_slice %4 {offsets = [3, 0], sizes = [1, 32], strides = [1, 1]} : vector<4x32xf32> to vector<1x32xf32>
    %26 = vector.broadcast %24 : vector<128x1xf32> to vector<128x32xf32>
    %27 = vector.broadcast %25 : vector<1x32xf32> to vector<128x32xf32>
    %28 = arith.mulf %26, %27 : vector<128x32xf32>
    %29 = arith.addf %23, %28 : vector<128x32xf32>
    %30 = vector.broadcast %5 : vector<1x32xf32> to vector<128x32xf32>
    %31 = arith.addf %29, %30 : vector<128x32xf32>
    %cst = arith.constant 0.000000e+00 : f32
    %32 = vector.broadcast %cst : f32 to vector<128x32xf32>
    %33 = arith.cmpf ogt, %31, %32 : vector<128x32xf32>
    %cst_8 = arith.constant 2.000000e-01 : f32
    %34 = vector.broadcast %cst_8 : f32 to vector<128x32xf32>
    %35 = arith.mulf %34, %31 : vector<128x32xf32>
    %36 = arith.select %33, %31, %35 : vector<128x32xi1>, vector<128x32xf32>
    %cst_9 = arith.constant dense<0.000000e+00> : vector<128x64xf32>
    %37 = tpu.matmul %36, %6, %cst_9 {dimension_numbers = #tpu.dot_dimension_numbers<[1], [0], [0], [1], [0, 0, 1, 1], [], []>} : vector<128x32xf32>, vector<32x64xf32>, vector<128x64xf32> -> vector<128x64xf32>
    %c0_10 = arith.constant 0 : index
    %c0_11 = arith.constant 0 : index
    %c0_12 = arith.constant 0 : index
    %38 = vector.load %arg6[%c0_10, %c0_11, %c0_12] : memref<1x1x64xf32, #tpu.memory_space<vmem>>, vector<1x1x64xf32>
    %39 = vector.shape_cast %38 : vector<1x1x64xf32> to vector<1x64xf32>
    %cst_13 = arith.constant dense<0.000000e+00> : vector<64xf32>
    %40 = vector.multi_reduction <add>, %37, %cst_13 [0] : vector<128x64xf32> to vector<64xf32>
    %41 = vector.shape_cast %40 : vector<64xf32> to vector<1x64xf32>
    %42 = arith.addf %39, %41 : vector<1x64xf32>
    %c0_14 = arith.constant 0 : index
    %c0_15 = arith.constant 0 : index
    %c0_16 = arith.constant 0 : index
    %43 = vector.load %arg6[%c0_14, %c0_15, %c0_16] : memref<1x1x64xf32, #tpu.memory_space<vmem>>, vector<1x1x64xf32>
    %44 = vector.shape_cast %43 : vector<1x1x64xf32> to vector<1x64xf32>
    %45 = vector.shape_cast %42 : vector<1x64xf32> to vector<1x1x64xf32>
    tpu.vector_store %arg6[%c0_14, %c0_15, %c0_16], %45 {strides = array<i32>} : memref<1x1x64xf32, #tpu.memory_space<vmem>>, vector<1x1x64xf32>,
    %c0_17 = arith.constant 0 : index
    %c0_18 = arith.constant 0 : index
    %c0_19 = arith.constant 0 : index
    %46 = vector.load %arg7[%c0_17, %c0_18, %c0_19] : memref<1x1x64xf32, #tpu.memory_space<vmem>>, vector<1x1x64xf32>
    %47 = vector.shape_cast %46 : vector<1x1x64xf32> to vector<1x64xf32>
    %48 = arith.mulf %37, %37 : vector<128x64xf32>
    %cst_20 = arith.constant dense<0.000000e+00> : vector<64xf32>
    %49 = vector.multi_reduction <add>, %48, %cst_20 [0] : vector<128x64xf32> to vector<64xf32>
    %50 = vector.shape_cast %49 : vector<64xf32> to vector<1x64xf32>
    %51 = arith.addf %47, %50 : vector<1x64xf32>
    %c0_21 = arith.constant 0 : index
    %c0_22 = arith.constant 0 : index
    %c0_23 = arith.constant 0 : index
    %52 = vector.load %arg7[%c0_21, %c0_22, %c0_23] : memref<1x1x64xf32, #tpu.memory_space<vmem>>, vector<1x1x64xf32>
    %53 = vector.shape_cast %52 : vector<1x1x64xf32> to vector<1x64xf32>
    %54 = vector.shape_cast %51 : vector<1x64xf32> to vector<1x1x64xf32>
    tpu.vector_store %arg7[%c0_21, %c0_22, %c0_23], %54 {strides = array<i32>} : memref<1x1x64xf32, #tpu.memory_space<vmem>>, vector<1x1x64xf32>,
    return
  }
  func.func @transform_0(%arg0: i32, %arg1: i32) -> (i32, i32) {
    %c2_i32 = arith.constant 2 : i32
    %0 = arith.muli %arg0, %c2_i32 : i32
    %1 = arith.addi %0, %arg1 : i32
    %c0_i32 = arith.constant 0 : i32
    %c0_i32_0 = arith.constant 0 : i32
    return %1, %c0_i32 : i32, i32
  }
  func.func @transform_1(%arg0: i32, %arg1: i32) -> (i32, i32) {
    %c0_i32 = arith.constant 0 : i32
    %c0_i32_0 = arith.constant 0 : i32
    %c0_i32_1 = arith.constant 0 : i32
    return %c0_i32, %c0_i32_0 : i32, i32
  }
  func.func @transform_2(%arg0: i32, %arg1: i32) -> (i32, i32) {
    %c0_i32 = arith.constant 0 : i32
    %c0_i32_0 = arith.constant 0 : i32
    %c0_i32_1 = arith.constant 0 : i32
    return %c0_i32, %c0_i32_0 : i32, i32
  }
  func.func @transform_3(%arg0: i32, %arg1: i32) -> (i32, i32) {
    %c0_i32 = arith.constant 0 : i32
    %c0_i32_0 = arith.constant 0 : i32
    %c0_i32_1 = arith.constant 0 : i32
    return %c0_i32, %c0_i32_0 : i32, i32
  }
  func.func @transform_4(%arg0: i32, %arg1: i32) -> (i32, i32, i32) {
    %c0_i32 = arith.constant 0 : i32
    %c0_i32_0 = arith.constant 0 : i32
    %c0_i32_1 = arith.constant 0 : i32
    return %arg0, %c0_i32, %c0_i32_0 : i32, i32, i32
  }
  func.func @transform_5(%arg0: i32, %arg1: i32) -> (i32, i32, i32) {
    %c0_i32 = arith.constant 0 : i32
    %c0_i32_0 = arith.constant 0 : i32
    %c0_i32_1 = arith.constant 0 : i32
    return %arg0, %c0_i32, %c0_i32_0 : i32, i32, i32
  }
}

</mosaic_0001>

<bundles_post_ra>
// kernel: tpu_custom_call.1
= control target key start
LH: loop header
LB: loop body
LE: loop exit
PB: predicated region body
PF: predicated region fallthrough
CT: control target
= control target key end

     0   :  { %s2038_s0 = inlined_call_operand.vmem [shape: f32[512,4], index: 0, kind: input, shape index: {}]   ;;  %s2039_s1 = inlined_call_operand.vmem [shape: f32[4,32], index: 1, kind: input, shape index: {}]   ;;  %s2040_s2 = inlined_call_operand.vmem [shape: f32[1,32], index: 2, kind: input, shape index: {}]   ;;  %s2041_s3 = inlined_call_operand.vmem [shape: f32[32,64], index: 3, kind: input, shape index: {}]   ;;  %s2042_s4 = inlined_call_operand.hbm [shape: f32[2,1,64], index: 4, kind: output, shape index: {0}]   ;;  %s2043_s5 = inlined_call_operand.hbm [shape: f32[2,1,64], index: 5, kind: output, shape index: {1}]  }
   0x1   :  { %2044 = sst [smem:[#allocation8_spill]] %s2038_s0 }
   0x2   :  { %11 = vsyncpa [#allocation3], 0 }
   0x3   :  { %13 = vsyncpa [#allocation3 + $0x1], 0 }
   0x4   :  { %14 = vsyncpa [#allocation5], 0 }
   0x5   :  { %16 = vsyncpa [#allocation5 + $0x1], 0  ;;  %s1561_s18 = smov 0   ;;  %s1563_s19 = smov 0  }
   0x6   :  { %s1565_s20 = smov 0   ;;  %s1567_s21 = smov 0  }
   0x7   :  { %s1569_s22 = smov 0   ;;  %s1571_s23 = smov 0  }
   0x8   :  { %s1573_s24 = smov 0   ;;  %s1575_s25 = smov 0  }
   0x9 LB: > { %s1175_s26 = sadd.s32 4294967295, %s1522_s25   ;;  %s1176_s27 = sadd.s32 4294967294, %s1522_s25   ;;  %s1522_s25 = sphi %s1575_s25, %s22_s25   ;;  %s1518_s24 = sphi %s1573_s24, %s2054_s24   ;;  %s1514_s23 = sphi %s1571_s23, %s2053_s23   ;;  %s1510_s22 = sphi %s1569_s22, %s2052_s22   ;;  %s1506_s21 = sphi %s1567_s21, %s2051_s21   ;;  %s1502_s20 = sphi %s1565_s20, %s2050_s20   ;;  %s1498_s19 = sphi %s1563_s19, %s2049_s19   ;;  %s1494_s18 = sphi %s1561_s18, %s2048_s18  }
   0xa   : > { %s31_s28 = sadd.s32 1, %s1514_s23  ;;  %s34_s29 = sadd.s32 1, %s1518_s24 }
   0xb   : > { %p32_p0 = scmp.ge.s32.totalorder %s31_s28, 2  ;;  %p144_p1 = scmp.ne.s32.totalorder %s1502_s20, %s1498_s19 }
   0xc   : > { %p145_p2 = scmp.eq.s32.totalorder %s1175_s26, 3  ;;  %p150_p4 = scmp.ne.s32.totalorder %s1498_s19, %s1494_s18 }
   0xd   : > { %s2056_s28 = smov (%p32_p0, %s31_s28), 0  ;;  %s2058_s29 = smov (!%p32_p0, %s34_s29), %s1518_s24 }
   0xe   : > { %p1610_p3 = por %p145_p2, %p144_p1  ;;  %p36_p5 = scmp.ge.s32.totalorder %s2058_s29, 2 }
   0xf   : > { %p151_p6 = scmp.eq.s32.totalorder %s1176_s27, 3  ;;  %p1181_p7 = scmp.ge.s32.totalorder %s1522_s25, 1 }
  0x10   : > { %p217_p8 = scmp.lt.s32.totalorder %s1522_s25, 5  ;;  %s2060_s29 = smov (%p36_p5, %s2058_s29), 0 }
  0x11   : > { %p1620_p9 = por %p151_p6, %p150_p4  ;;  %s131_s7 = ssub.s32 %s1518_s24, %s2060_s29 }
  0x12   : > { %p218_p10 = pnand %p1181_p7, %p217_p8  ;;  %s134_s8 = sadd.s32 1, %s1502_s20 }
  0x13   : > { %p132_p11 = scmp.eq.s32.totalorder %s131_s7, 0  ;;  %s1631_s10 = sand.u32 (!%p218_p10), 1, %s1498_s19  }
  0x14   : > { %221 = sbr.rel (%p218_p10) target bundleno = 636 (0x27c), region = 36  ;;  %s1182_s11 = sshll.u32 (!%p218_p10), %s1510_s22, 1 }
  0x15   : > { %s1628_s9 = scalar_select %p132_p11, %s1502_s20, %s134_s8  }
  0x16   : > { %s251_s12 = sadd.s32 (!%p218_p10), %s1506_s21, %s1182_s11  ;;  %s2047_s0 = sld [smem:[#allocation8_spill]] (!%p218_p10) }
  0x17   : > { %s1183_s13 = sshll.u32 (!%p218_p10), %s251_s12, 4  ;;  %s1641_s26 = scalar_lea.vmem (!%p218_p10), [#allocation2], %s1631_s10 }
  0x18   : > { %p253_p12 = scmp.lt.s32.totalorder (!%p218_p10), %s1183_s13, 63  ;;  %s1644_s27 = scalar_lea.vmem (!%p218_p10), [#allocation4], %s1631_s10 }
  0x19   : > { %p1185_p13 = scmp.ne.s32.totalorder (!%p218_p10), %s1506_s21, 0 }
  0x1b   : > { %s2062_s13 = smov (!%p253_p12, %s1183_s13), 63  ;;  %263 = sbr.rel (%p1185_p13) target bundleno = 34 (0x22), region = 40 }
  0x1c   : > { %s1184_s14 = sshll.u32 %s2062_s13, 3  ;;  %vm264_vm0 = vcmask (!%p1185_p13), 516096   ;;  %v1524_v0 = vmov (!%p1185_p13), 0.0  }
  0x1d   : > { %s1638_s17 = scalar_lea.vmem %s2047_s0, %s1184_s14  ;;  %265 = vst.msk [vmem:[%s1641_s26] sm:$0x1] (!%p1185_p13), %vm264_vm0, %v1524_v0  ;;  %266 = vst.msk [vmem:[%s1644_s27] sm:$0x1] (!%p1185_p13), %vm264_vm0, %v1524_v0 }
  0x22 PF: > { %v1650_v1 = vld [vmem:[%s1638_s17 + $0x8] sm:$0xff]  ;;  %v267_v2 = vld [vmem:[%s1638_s17] sm:$0xff]  ;;  %v1525_v3 = vmov 0   ;;  %v1526_v4 = vmov 1   ;;  %v1527_v5 = vmov 2   ;;  %v1528_v6 = vmov 3  }
  0x23   : > { %1354 = vset.pattern.permute.xlu1 %v1525_v3  ;;  %1352 = vset.pattern.permute.xlu0 %v1525_v3  ;;  %v269_v7 = vld [vmem:[%s1638_s17 + $0x10] sm:$0xff]  ;;  %v270_v8 = vld [vmem:[%s1638_s17 + $0x18] sm:$0xff]  ;;  %v271_v9 = vld [vmem:[%s1638_s17 + $0x20] sm:$0xff]  ;;  %v369_v26 = vlaneseq  ;;  %vm759_vm2 = vcmask 261120   ;;  %s1068_s11 = sshll.u32 %s1641_s26, 4  ;;  %s1081_s12 = sshll.u32 %s1644_s27, 4  ;;  %s1953_s11 = int_to_ptr.vmem [resolvable:$true] %s1068_s11  ;;  %s1962_s12 = int_to_ptr.vmem [resolvable:$true] %s1081_s12 }
  0x24   : > { %296 = vperm.xlu1 %1354, %v1650_v1   ;;  %291 = vperm.xlu0 %1352, %v267_v2   ;;  %v272_v10 = vld [vmem:[%s1638_s17 + $0x28] sm:$0xff]  ;;  %v273_v11 = vld [vmem:[%s1638_s17 + $0x30] sm:$0xff]  ;;  %v274_v12 = vld [vmem:[%s1638_s17 + $0x38] sm:$0xff]  ;;  %s1052_s7 = scalar_lea.sflag [#allocation3], %s1631_s10  ;;  %s1396_s8 = scalar_lea.vmem %s1953_s11, 16 }
  0x25   : > { %v1675_v13 = vld [vmem:[%s1638_s17 + $0x40] sm:$0xff]  ;;  %v276_v14 = vld [vmem:[%s1638_s17 + $0x48] sm:$0xff]  ;;  %v1681_v15 = vld [vmem:[%s1638_s17 + $0x50] sm:$0xff]  ;;  %v370_v27 = vshrl.u32 %v369_v26, 7  ;;  %p1397_p0 = scmp.ne.s32.totalorder %s1953_s11, %s1396_s8  ;;  %s1529_s13 = smov [#allocation2]  }
  0x26   : > { %v1686_v16 = vld [vmem:[%s1638_s17 + $0x58] sm:$0xff]  ;;  %v1691_v17 = vld [vmem:[%s1638_s17 + $0x60] sm:$0xff]  ;;  %v1696_v18 = vld [vmem:[%s1638_s17 + $0x68] sm:$0xff]  ;;  %s1400_s14 = sshll.u32 %s1529_s13, 4  ;;  %s1401_s14 = int_to_ptr.vmem [resolvable:$false] %s1400_s14 }
  0x27   : > { %v285_v19 = vld [vmem:[%s2041_s3] sm:$0xff]  ;;  %v286_v20 = vld [vmem:[%s2041_s3 + $0x8] sm:$0xff]  ;;  %v287_v22 = vld [vmem:[%s2041_s3 + $0x10] sm:$0xff]  ;;  %v371_v28 = vsub.s32 0, %v370_v27  ;;  %v455_v32 = vsub.s32 1, %v370_v27  ;;  %v555_v34 = vsub.s32 2, %v370_v27  ;;  %p1398_p1 = pnand %p1397_p0, %p1610_p3  ;;  %p1403_p4 = scmp.lt.s32.totalorder %s1953_s11, %s1401_s14 }
  0x28   : > { %1355 = vset.pattern.permute.xlu1 %v1526_v4  ;;  %1353 = vset.pattern.permute.xlu0 %v1526_v4  ;;  %v1259_v21 = vpack.c.bf16 %v286_v20, %v285_v19  ;;  %v288_v23 = vld [vmem:[%s2041_s3 + $0x18] sm:$0xff]  ;;  %v283_v29 = vld [vmem:[%s2039_s1] sm:$0xf]  ;;  %v655_v35 = vsub.s32 3, %v370_v27  ;;  %s1402_s0 = scalar_lea.vmem %s1401_s14, 32 }
  0x29   : > { %394 = vperm.xlu1 %1355, %v1650_v1   ;;  %390 = vperm.xlu0 %1353, %v267_v2   ;;  %v1263_v24 = vpack.c.bf16 %v288_v23, %v287_v22  ;;  %v1723_v25 = vld [vmem:[%s1638_s17 + $0x78] sm:$0xff]  ;;  %v1745_v33 = vrot.slane %v283_v29, %v371_v28  ;;  %v1748_v36 = vrot.slane %v283_v29, %v455_v32  ;;  %v1767_v49 = vld [vmem:[%s2040_s2] ss:$0 sm:$0xff]  ;;  %p1399_p2 = pneg %p1398_p1  ;;  %p1404_p5 = scmp.lt.s32.totalorder %s1402_s0, %s1396_s8 }
  0x2a   : > { %1260 = vmatprep.subr.bf16.mxu0 %v1259_v21  ;;  %1267 = vmatprep.subr.bf16.mxu1 %v1259_v21  ;;  %v1755_v41 = vrot.slane %v283_v29, %v555_v34  ;;  %v1757_v42 = vrot.slane %v283_v29, %v655_v35 }
  0x2b   : > { %1262 = vmatpush3.bf16.msra.mxu0 %v1259_v21  ;;  %1269 = vmatpush3.bf16.msra.mxu1 %v1259_v21  ;;  %p1405_p6 = por %p1404_p5, %p1403_p4 }
  0x2c   : > { %1264 = vmatprep.subr.bf16.mxu0 %v1263_v24  ;;  %1268 = vmatprep.subr.bf16.mxu1 %v1263_v24 }
  0x2d   : > { %1356 = vset.pattern.permute.xlu1 %v1527_v5  ;;  %1359 = vset.pattern.permute.xlu0 %v1528_v6  ;;  %p1406_p7 = pnand %p1405_p6, %p1399_p2 }
  0x2e   : > { %490 = vperm.xlu1 %1356, %v267_v2   ;;  %590 = vperm.xlu0 %1359, %v267_v2  }
  0x2f   : > { %1266 = vmatpush3.bf16.msra.mxu0 %v1263_v24  ;;  %1270 = vmatpush3.bf16.msra.mxu1 %v1263_v24 }
  0x32   : > { %1357 = vset.pattern.permute.xlu1 %v1525_v3  ;;  %594 = vperm.xlu0 %1359, %v1650_v1  }
  0x33   : > { %301 = vperm.xlu1 %1357, %v269_v7  }
  0x36   : > { %598 = vperm.xlu0 %1359, %v269_v7  }
  0x37   : > { %1358 = vset.pattern.permute.xlu1 %v1526_v4 }
  0x38   : > { %398 = vperm.xlu1 %1358, %v269_v7  }
  0x3a   : > { %602 = vperm.xlu0 %1359, %v270_v8  }
  0x3c   : > { %1360 = vset.pattern.permute.xlu1 %v1525_v3 }
  0x3d   : > { %306 = vperm.xlu1 %1360, %v270_v8  }
  0x3e   : > { %606 = vperm.xlu0 %1359, %v271_v9  }
  0x41   : > { %1361 = vset.pattern.permute.xlu1 %v1526_v4 }
  0x42   : > { %402 = vperm.xlu1 %1361, %v270_v8   ;;  %610 = vperm.xlu0 %1359, %v272_v10  }
  0x46   : > { %1362 = vset.pattern.permute.xlu1 %v1527_v5  ;;  %614 = vperm.xlu0 %1359, %v273_v11  }
  0x47   : > { %498 = vperm.xlu1 %1362, %v269_v7  }
  0x4a   : > { %618 = vperm.xlu0 %1359, %v274_v12  }
  0x4b   : > { %1363 = vset.pattern.permute.xlu1 %v1525_v3 }
  0x4c   : > { %311 = vperm.xlu1 %1363, %v271_v9  }
  0x4e   : > { %622 = vperm.xlu0 %1359, %v1675_v13  }
  0x50   : > { %1364 = vset.pattern.permute.xlu1 %v1526_v4 }
  0x51   : > { %406 = vperm.xlu1 %1364, %v271_v9  }
  0x52   : > { %626 = vperm.xlu0 %1359, %v276_v14  }
  0x55   : > { %1365 = vset.pattern.permute.xlu1 %v1525_v3 }
  0x56   : > { %316 = vperm.xlu1 %1365, %v272_v10   ;;  %630 = vperm.xlu0 %1359, %v1681_v15  }
  0x5a   : > { %1366 = vset.pattern.permute.xlu1 %v1526_v4  ;;  %634 = vperm.xlu0 %1359, %v1686_v16  }
  0x5b   : > { %410 = vperm.xlu1 %1366, %v272_v10  }
  0x5e   : > { %638 = vperm.xlu0 %1359, %v1691_v17  }
  0x5f   : > { %1367 = vset.pattern.permute.xlu1 %v1527_v5 }
  0x60   : > { %506 = vperm.xlu1 %1367, %v271_v9  }
  0x62   : > { %642 = vperm.xlu0 %1359, %v1696_v18  }
  0x64   : > { %1368 = vset.pattern.permute.xlu1 %v1525_v3 }
  0x65   : > { %321 = vperm.xlu1 %1368, %v273_v11  }
  0x66   : > { %1392 = vset.pattern.permute.xlu0 %v1527_v5 }
  0x67   : > { %494 = vperm.xlu0 %1392, %v1650_v1   ;;  %v281_v1 = vld [vmem:[%s1638_s17 + $0x70] sm:$0xff]  ;;  %s1203_s17 = sshll.u32 %s1510_s22, 4 }
  0x68   : > { %s1951_s15 = scalar_lea.hbm %s2042_s4, %s1203_s17  ;;  %s1960_s21 = scalar_lea.hbm %s2043_s5, %s1203_s17 }
  0x69   : > { %1369 = vset.pattern.permute.xlu1 %v1526_v4 }
  0x6a   : > { %414 = vperm.xlu1 %1369, %v273_v11  }
  0x6b   : > { %502 = vperm.xlu0 %1392, %v270_v8  }
  0x6e   : > { %1370 = vset.pattern.permute.xlu1 %v1525_v3 }
  0x6f   : > { %326 = vperm.xlu1 %1370, %v274_v12   ;;  %510 = vperm.xlu0 %1392, %v272_v10  }
  0x73   : > { %1371 = vset.pattern.permute.xlu1 %v1526_v4  ;;  %518 = vperm.xlu0 %1392, %v274_v12  }
  0x74   : > { %418 = vperm.xlu1 %1371, %v274_v12  }
  0x77   : > { %526 = vperm.xlu0 %1392, %v276_v14  }
  0x78   : > { %1372 = vset.pattern.permute.xlu1 %v1527_v5 }
  0x79   : > { %514 = vperm.xlu1 %1372, %v273_v11  }
  0x7b   : > { %534 = vperm.xlu0 %1392, %v1686_v16  }
  0x7d   : > { %1373 = vset.pattern.permute.xlu1 %v1525_v3 }
  0x7e   : > { %331 = vperm.xlu1 %1373, %v1675_v13  }
  0x7f   : > { %542 = vperm.xlu0 %1392, %v1696_v18  }
  0x82   : > { %1374 = vset.pattern.permute.xlu1 %v1526_v4 }
  0x83   : > { %422 = vperm.xlu1 %1374, %v1675_v13   ;;  %550 = vperm.xlu0 %1392, %v1723_v25  }
  0x87   : > { %1375 = vset.pattern.permute.xlu1 %v1525_v3  ;;  %1395 = vset.pattern.permute.xlu0 %v1528_v6 }
  0x88   : > { %336 = vperm.xlu1 %1375, %v276_v14  }
  0x8c   : > { %1376 = vset.pattern.permute.xlu1 %v1526_v4 }
  0x8d   : > { %426 = vperm.xlu1 %1376, %v276_v14  }
  0x91   : > { %1377 = vset.pattern.permute.xlu1 %v1527_v5 }
  0x92   : > { %522 = vperm.xlu1 %1377, %v1675_v13  }
  0x96   : > { %1378 = vset.pattern.permute.xlu1 %v1525_v3 }
  0x97   : > { %341 = vperm.xlu1 %1378, %v1681_v15  }
  0x9b   : > { %1379 = vset.pattern.permute.xlu1 %v1526_v4 }
  0x9c   : > { %430 = vperm.xlu1 %1379, %v1681_v15  }
  0xa0   : > { %1380 = vset.pattern.permute.xlu1 %v1525_v3 }
  0xa1   : > { %346 = vperm.xlu1 %1380, %v1686_v16  }
  0xa3   : > { %v1742_v30 = vpop.permute.xlu1 %296  ;;  %v292_v31 = vpop.permute.xlu0 %291 }
  0xa4   : > { %v373_v37 = vmul.f32 %v1745_v33, %v292_v31  ;;  %v374_v26 = vmul.f32 %v1745_v33, %v1742_v30 }
  0xa5   : > { %1381 = vset.pattern.permute.xlu1 %v1526_v4 }
  0xa6   : > { %434 = vperm.xlu1 %1381, %v1686_v16  }
  0xa8   : > { %v1751_v38 = vpop.permute.xlu1 %394  ;;  %v391_v39 = vpop.permute.xlu0 %390 }
  0xa9   : > { %v457_v40 = vmul.f32 %v1748_v36, %v391_v39  ;;  %v458_v21 = vmul.f32 %v1748_v36, %v1751_v38 }
  0xaa   : > { %1382 = vset.pattern.permute.xlu1 %v1527_v5 }
  0xab   : > { %530 = vperm.xlu1 %1382, %v1681_v15   ;;  %v473_v43 = vadd.f32 %v457_v40, %v373_v37  ;;  %v474_v29 = vadd.f32 %v458_v21, %v374_v26 }
  0xad   : > { %v491_v44 = vpop.permute.xlu1 %490  ;;  %v591_v45 = vpop.permute.xlu0 %590 }
  0xae   : > { %v557_v46 = vmul.f32 %v1755_v41, %v491_v44  ;;  %v657_v47 = vmul.f32 %v1757_v42, %v591_v45 }
  0xaf   : > { %1383 = vset.pattern.permute.xlu1 %v1525_v3 }
  0xb0   : > { %v573_v48 = vadd.f32 %v557_v46, %v473_v43  ;;  %351 = vperm.xlu1 %1383, %v1691_v17  }
  0xb1   : > { %v1769_v50 = vpop.permute.xlu0 %594 }
  0xb2   : > { %v673_v51 = vadd.f32 %v657_v47, %v573_v48  ;;  %v302_v52 = vpop.permute.xlu1 %301 }
  0xb4   : > { %v695_v53 = vadd.f32 %v1767_v49, %v673_v51  ;;  %1384 = vset.pattern.permute.xlu1 %v1526_v4 }
  0xb5   : > { %438 = vperm.xlu1 %1384, %v1691_v17   ;;  %v599_v54 = vpop.permute.xlu0 %598 }
  0xb6   : > { %vm711_vm1 = vcmp.gt.f32.partialorder %v695_v53, 0.0  ;;  %v727_v55 = vmul.f32 0.2, %v695_v53 }
  0xb7   : > { %v399_v56 = vpop.permute.xlu1 %398 }
  0xb8   : > { %v743_v57 = vsel %vm711_vm1, %v695_v53, %v727_v55  ;;  %v459_v15 = vmul.f32 %v1748_v36, %v399_v56 }
  0xb9   : > { %1385 = vset.pattern.permute.xlu1 %v1525_v3  ;;  %1235 = vmatprep.mubr.msk.f32.mxu0 %vm759_vm2, %v743_v57  ;;  %v603_v58 = vpop.permute.xlu0 %602 }
  0xba   : > { %356 = vperm.xlu1 %1385, %v1696_v18   ;;  %v660_v43 = vmul.f32 %v1757_v42, %v603_v58 }
  0xbc   : > { %v307_v59 = vpop.permute.xlu1 %306 }
  0xbd   : > { %v607_v60 = vpop.permute.xlu0 %606  ;;  %v376_v39 = vmul.f32 %v1745_v33, %v307_v59 }
  0xbe   : > { %1386 = vset.pattern.permute.xlu1 %v1526_v4  ;;  %v661_v34 = vmul.f32 %v1757_v42, %v607_v60 }
  0xbf   : > { %442 = vperm.xlu1 %1386, %v1696_v18  }
  0xc1   : > { %v403_v61 = vpop.permute.xlu1 %402  ;;  %v1779_v62 = vpop.permute.xlu0 %610 }
  0xc2   : > { %v460_v35 = vmul.f32 %v1748_v36, %v403_v61 }
  0xc3   : > { %1387 = vset.pattern.permute.xlu1 %v1527_v5 }
  0xc4   : > { %538 = vperm.xlu1 %1387, %v1691_v17  }
  0xc5   : > { %v1783_v63 = vpop.permute.xlu0 %614 }
  0xc6   : > { %v499_v0 = vpop.permute.xlu1 %498 }
  0xc7   : > { %v559_v17 = vmul.f32 %v1755_v41, %v499_v0 }
  0xc8   : > { %1388 = vset.pattern.permute.xlu1 %v1525_v3 }
  0xc9   : > { %361 = vperm.xlu1 %1388, %v281_v1   ;;  %v1787_v2 = vpop.permute.xlu0 %618 }
  0xcb   : > { %v312_v7 = vpop.permute.xlu1 %311 }
  0xcc   : > { %v377_v23 = vmul.f32 %v1745_v33, %v312_v7 }
  0xcd   : > { %1389 = vset.pattern.permute.xlu1 %v1526_v4  ;;  %v1790_v8 = vpop.permute.xlu0 %622 }
  0xce   : > { %446 = vperm.xlu1 %1389, %v281_v1  }
  0xd0   : > { %v407_v9 = vpop.permute.xlu1 %406 }
  0xd1   : > { %v1792_v10 = vpop.permute.xlu0 %626 }
  0xd2   : > { %1390 = vset.pattern.permute.xlu1 %v1525_v3  ;;  %v375_v3 = vmul.f32 %v1745_v33, %v302_v52 }
  0xd3   : > { %366 = vperm.xlu1 %1390, %v1723_v25  }
  0xd4   : > { %v475_v19 = vadd.f32 %v459_v15, %v375_v3 }
  0xd5   : > { %v317_v11 = vpop.permute.xlu1 %316  ;;  %v1796_v12 = vpop.permute.xlu0 %630 }
  0xd6   : > { %v575_v22 = vadd.f32 %v559_v17, %v475_v19  ;;  %v378_v51 = vmul.f32 %v1745_v33, %v317_v11 }
  0xd7   : > { %1391 = vset.pattern.permute.xlu1 %v1526_v4  ;;  %v461_v4 = vmul.f32 %v1748_v36, %v407_v9 }
  0xd8   : > { %450 = vperm.xlu1 %1391, %v1723_v25  }
  0xd9   : > { %v1800_v13 = vpop.permute.xlu0 %634  ;;  %v477_v28 = vadd.f32 %v461_v4, %v377_v23  ;;  %v664_v23 = vmul.f32 %v1757_v42, %v1787_v2 }
  0xda   : > { %v411_v14 = vpop.permute.xlu1 %410 }
  0xdb   : > { %v462_v45 = vmul.f32 %v1748_v36, %v411_v14 }
  0xdc   : > { %1393 = vset.pattern.permute.xlu1 %v1527_v5  ;;  %v659_v5 = vmul.f32 %v1757_v42, %v599_v54  ;;  %v662_v54 = vmul.f32 %v1757_v42, %v1779_v62 }
  0xdd   : > { %546 = vperm.xlu1 %1393, %v281_v1   ;;  %v1804_v16 = vpop.permute.xlu0 %638  ;;  %v478_v55 = vadd.f32 %v462_v45, %v378_v51 }
  0xde   : > { %v675_v31 = vadd.f32 %v659_v5, %v575_v22 }
  0xdf   : > { %v507_v18 = vpop.permute.xlu1 %506 }
  0xe0   : > { %v561_v24 = vmul.f32 %v1755_v41, %v507_v18  ;;  %v697_v44 = vadd.f32 %v1767_v49, %v675_v31 }
  0xe1   : > { %1394 = vset.pattern.permute.xlu1 %v1528_v6  ;;  %v1810_v20 = vpop.permute.xlu0 %642  ;;  %v658_v6 = vmul.f32 %v1757_v42, %v1769_v50 }
  0xe2   : > { %646 = vperm.xlu1 %1394, %v281_v1   ;;  %v577_v37 = vadd.f32 %v561_v24, %v477_v28  ;;  %vm713_vm3 = vcmp.gt.f32.partialorder %v697_v44, 0.0  ;;  %v729_v58 = vmul.f32 0.2, %v697_v44 }
  0xe4   : > { %v322_v27 = vpop.permute.xlu1 %321  ;;  %v677_v47 = vadd.f32 %v661_v34, %v577_v37  ;;  %v745_v11 = vsel %vm713_vm3, %v697_v44, %v729_v58  ;;  %vm954_vm3 = vcmask 523264  }
  0xe5   : > { %v379_v26 = vmul.f32 %v1745_v33, %v322_v27 }
  0xe6   : > { %650 = vperm.xlu1 %1394, %v1723_v25   ;;  %v495_v32 = vpop.permute.xlu0 %494  ;;  %v476_v25 = vadd.f32 %v460_v35, %v376_v39  ;;  %v699_v59 = vadd.f32 %v1767_v49, %v677_v47 }
  0xe7   : > { %v558_v38 = vmul.f32 %v1755_v41, %v495_v32  ;;  %v663_v32 = vmul.f32 %v1757_v42, %v1783_v63 }
  0xe8   : > { %v731_v17 = vmul.f32 0.2, %v699_v59  ;;  %vm715_vm6 = vcmp.gt.f32.partialorder %v699_v59, 0.0 }
  0xe9   : > { %v574_v30 = vadd.f32 %v558_v38, %v474_v29  ;;  %v415_v40 = vpop.permute.xlu1 %414 }
  0xea   : > { %v503_v46 = vpop.permute.xlu0 %502  ;;  %v463_v21 = vmul.f32 %v1748_v36, %v415_v40  ;;  %v747_v28 = vsel %vm715_vm6, %v699_v59, %v731_v17 }
  0xeb   : > { %v674_v48 = vadd.f32 %v658_v6, %v574_v30  ;;  %v560_v50 = vmul.f32 %v1755_v41, %v503_v46 }
  0xec   : > { %v479_v34 = vadd.f32 %v463_v21, %v379_v26  ;;  %v668_v26 = vmul.f32 %v1757_v42, %v1800_v13 }
  0xed   : > { %v696_v52 = vadd.f32 %v1767_v49, %v674_v48  ;;  %v576_v53 = vadd.f32 %v560_v50, %v476_v25 }
  0xee   : > { %v327_v56 = vpop.permute.xlu1 %326  ;;  %v511_v57 = vpop.permute.xlu0 %510 }
  0xef   : > { %v676_v60 = vadd.f32 %v660_v43, %v576_v53  ;;  %v562_v61 = vmul.f32 %v1755_v41, %v511_v57  ;;  %vm712_vm4 = vcmp.gt.f32.partialorder %v696_v52, 0.0  ;;  %v728_v0 = vmul.f32 0.2, %v696_v52 }
  0xf0   : > { %v380_v18 = vmul.f32 %v1745_v33, %v327_v56  ;;  %v666_v56 = vmul.f32 %v1757_v42, %v1792_v10 }
  0xf1   : > { %v698_v1 = vadd.f32 %v1767_v49, %v676_v60  ;;  %v578_v7 = vadd.f32 %v562_v61, %v478_v55  ;;  %v744_v9 = vsel %vm712_vm4, %v696_v52, %v728_v0  ;;  %v665_v0 = vmul.f32 %v1757_v42, %v1790_v8 }
  0xf2   : > { %v519_v14 = vpop.permute.xlu0 %518  ;;  %1236 = vmatmul.mubr.msk.f32.vlgmr.msra.gmra.mrb[0].mxu0 %vm759_vm2, %v744_v9 }
  0xf3   : > { %v678_v15 = vadd.f32 %v662_v54, %v578_v7  ;;  %v419_v62 = vpop.permute.xlu1 %418  ;;  %vm714_vm5 = vcmp.gt.f32.partialorder %v698_v1, 0.0  ;;  %v730_v3 = vmul.f32 0.2, %v698_v1  ;;  %1238 = vmatprep.mubr.msk.f32.mxu0 %vm759_vm2, %v745_v11  ;;  %v564_v4 = vmul.f32 %v1755_v41, %v519_v14 }
  0xf4   : > { %v464_v19 = vmul.f32 %v1748_v36, %v419_v62 }
  0xf5   : > { %v700_v5 = vadd.f32 %v1767_v49, %v678_v15  ;;  %v746_v22 = vsel %vm714_vm5, %v698_v1, %v730_v3 }
  0xf6   : > { %v480_v24 = vadd.f32 %v464_v19, %v380_v18  ;;  %1239 = vmatmul.mubr.msk.f32.gmra.mrb[2].mxu0 %vm759_vm2, %v746_v22  ;;  %v527_v47 = vpop.permute.xlu0 %526 }
  0xf7   : > { %vm716_vm7 = vcmp.gt.f32.partialorder %v700_v5, 0.0  ;;  %v732_v29 = vmul.f32 0.2, %v700_v5  ;;  %1241 = vmatprep.mubr.msk.f32.mxu0 %vm759_vm2, %v747_v28  ;;  %v566_v52 = vmul.f32 %v1755_v41, %v527_v47 }
  0xf8   : > { %v580_v6 = vadd.f32 %v564_v4, %v480_v24  ;;  %v515_v31 = vpop.permute.xlu1 %514 }
  0xf9   : > { %v563_v35 = vmul.f32 %v1755_v41, %v515_v31  ;;  %v748_v37 = vsel %vm716_vm7, %v700_v5, %v732_v29 }
  0xfa   : > { %v680_v2 = vadd.f32 %v664_v23, %v580_v6  ;;  %1242 = vmatmul.mubr.msk.f32.gmra.mrb[4].mxu0 %vm759_vm2, %v748_v37  ;;  %v535_v8 = vpop.permute.xlu0 %534 }
  0xfb   : > { %v579_v38 = vadd.f32 %v563_v35, %v479_v34  ;;  %v568_v5 = vmul.f32 %v1755_v41, %v535_v8  ;;  %v667_v34 = vmul.f32 %v1757_v42, %v1796_v12 }
  0xfc   : > { %v702_v27 = vadd.f32 %v1767_v49, %v680_v2 }
  0xfd   : > { %v679_v39 = vadd.f32 %v663_v32, %v579_v38  ;;  %v332_v30 = vpop.permute.xlu1 %331 }
  0xfe   : > { %v734_v43 = vmul.f32 0.2, %v702_v27  ;;  %vm718_vm9 = vcmp.gt.f32.partialorder %v702_v27, 0.0  ;;  %v381_v55 = vmul.f32 %v1745_v33, %v332_v30  ;;  %v543_v12 = vpop.permute.xlu0 %542 }
  0xff   : > { %v701_v40 = vadd.f32 %v1767_v49, %v679_v39 }
 0x100   : > { %v750_v46 = vsel %vm718_vm9, %v702_v27, %v734_v43 }
 0x101   : > { %vm717_vm8 = vcmp.gt.f32.partialorder %v701_v40, 0.0  ;;  %v733_v44 = vmul.f32 0.2, %v701_v40 }
 0x102   : > { %v423_v45 = vpop.permute.xlu1 %422 }
 0x103   : > { %v749_v63 = vsel %vm717_vm8, %v701_v40, %v733_v44  ;;  %v465_v53 = vmul.f32 %v1748_v36, %v423_v45 }
 0x104   : > { %1244 = vmatprep.mubr.msk.f32.mxu0 %vm759_vm2, %v749_v63 }
 0x105   : > { %1245 = vmatmul.mubr.msk.f32.gmra.mrb[6].mxu0 %vm759_vm2, %v750_v46  ;;  %v481_v59 = vadd.f32 %v465_v53, %v381_v55 }
 0x107   : > { %v337_v25 = vpop.permute.xlu1 %336 }
 0x108   : > { %v382_v50 = vmul.f32 %v1745_v33, %v337_v25  ;;  %v570_v25 = vmul.f32 %v1755_v41, %v543_v12 }
 0x10c   : > { %v427_v48 = vpop.permute.xlu1 %426 }
 0x10d   : > { %v466_v51 = vmul.f32 %v1748_v36, %v427_v48 }
 0x10f   : > { %v482_v54 = vadd.f32 %v466_v51, %v382_v50  ;;  %v670_v51 = vmul.f32 %v1757_v42, %v1810_v20 }
 0x111   : > { %v582_v57 = vadd.f32 %v566_v52, %v482_v54  ;;  %v523_v58 = vpop.permute.xlu1 %522 }
 0x112   : > { %v565_v60 = vmul.f32 %v1755_v41, %v523_v58 }
 0x113   : > { %v682_v61 = vadd.f32 %v666_v56, %v582_v57  ;;  %v669_v57 = vmul.f32 %v1757_v42, %v1804_v16 }
 0x114   : > { %v581_v1 = vadd.f32 %v565_v60, %v481_v59 }
 0x115   : > { %v704_v7 = vadd.f32 %v1767_v49, %v682_v61 }
 0x116   : > { %v681_v9 = vadd.f32 %v665_v0, %v581_v1  ;;  %v342_v11 = vpop.permute.xlu1 %341 }
 0x117   : > { %v736_v15 = vmul.f32 0.2, %v704_v7  ;;  %vm720_vm11 = vcmp.gt.f32.partialorder %v704_v7, 0.0  ;;  %v383_v24 = vmul.f32 %v1745_v33, %v342_v11 }
 0x118   : > { %v703_v14 = vadd.f32 %v1767_v49, %v681_v9 }
 0x119   : > { %v752_v17 = vsel %vm720_vm11, %v704_v7, %v736_v15 }
 0x11a   : > { %vm719_vm10 = vcmp.gt.f32.partialorder %v703_v14, 0.0  ;;  %v735_v62 = vmul.f32 0.2, %v703_v14 }
 0x11b   : > { %v431_v10 = vpop.permute.xlu1 %430 }
 0x11c   : > { %v751_v3 = vsel %vm719_vm10, %v703_v14, %v735_v62  ;;  %v467_v22 = vmul.f32 %v1748_v36, %v431_v10 }
 0x11d   : > { %1247 = vmatprep.mubr.msk.f32.mxu1 %vm759_vm2, %v751_v3 }
 0x11e   : > { %1248 = vmatmul.mubr.msk.f32.vlgmr.msra.gmra.mrb[0].mxu1 %vm759_vm2, %v752_v17  ;;  %v483_v6 = vadd.f32 %v467_v22, %v383_v24 }
 0x120   : > { %v347_v18 = vpop.permute.xlu1 %346 }
 0x121   : > { %v384_v4 = vmul.f32 %v1745_v33, %v347_v18 }
 0x125   : > { %v435_v19 = vpop.permute.xlu1 %434 }
 0x126   : > { %v468_v21 = vmul.f32 %v1748_v36, %v435_v19  ;;  %v551_v19 = vpop.permute.xlu0 %550 }
 0x128   : > { %v484_v23 = vadd.f32 %v468_v21, %v384_v4 }
 0x12a   : > { %v584_v28 = vadd.f32 %v568_v5, %v484_v23  ;;  %v531_v29 = vpop.permute.xlu1 %530  ;;  %v572_v23 = vmul.f32 %v1755_v41, %v551_v19 }
 0x12b   : > { %v567_v31 = vmul.f32 %v1755_v41, %v531_v29 }
 0x12c   : > { %v684_v32 = vadd.f32 %v668_v26, %v584_v28 }
 0x12d   : > { %v583_v35 = vadd.f32 %v567_v31, %v483_v6 }
 0x12e   : > { %v706_v37 = vadd.f32 %v1767_v49, %v684_v32 }
 0x12f   : > { %v683_v2 = vadd.f32 %v667_v34, %v583_v35  ;;  %v352_v38 = vpop.permute.xlu1 %351 }
 0x130   : > { %v738_v39 = vmul.f32 0.2, %v706_v37  ;;  %vm722_vm13 = vcmp.gt.f32.partialorder %v706_v37, 0.0  ;;  %v385_v50 = vmul.f32 %v1745_v33, %v352_v38 }
 0x131   : > { %v705_v27 = vadd.f32 %v1767_v49, %v683_v2 }
 0x132   : > { %v754_v43 = vsel %vm722_vm13, %v706_v37, %v738_v39 }
 0x133   : > { %vm721_vm12 = vcmp.gt.f32.partialorder %v705_v27, 0.0  ;;  %v737_v30 = vmul.f32 0.2, %v705_v27 }
 0x134   : > { %v439_v13 = vpop.permute.xlu1 %438 }
 0x135   : > { %v753_v40 = vsel %vm721_vm12, %v705_v27, %v737_v30  ;;  %v469_v47 = vmul.f32 %v1748_v36, %v439_v13 }
 0x136   : > { %1250 = vmatprep.mubr.msk.f32.mxu1 %vm759_vm2, %v753_v40 }
 0x137   : > { %1251 = vmatmul.mubr.msk.f32.gmra.mrb[2].mxu1 %vm759_vm2, %v754_v43  ;;  %v485_v54 = vadd.f32 %v469_v47, %v385_v50 }
 0x139   : > { %v357_v44 = vpop.permute.xlu1 %356 }
 0x13a   : > { %v386_v63 = vmul.f32 %v1745_v33, %v357_v44 }
 0x13e   : > { %v443_v45 = vpop.permute.xlu1 %442 }
 0x13f   : > { %v470_v46 = vmul.f32 %v1748_v36, %v443_v45 }
 0x141   : > { %v486_v48 = vadd.f32 %v470_v46, %v386_v63 }
 0x143   : > { %v586_v52 = vadd.f32 %v570_v25, %v486_v48  ;;  %v539_v53 = vpop.permute.xlu1 %538 }
 0x144   : > { %v569_v55 = vmul.f32 %v1755_v41, %v539_v53 }
 0x145   : > { %v686_v56 = vadd.f32 %v670_v51, %v586_v52 }
 0x146   : > { %v585_v58 = vadd.f32 %v569_v55, %v485_v54 }
 0x147   : > { %v708_v59 = vadd.f32 %v1767_v49, %v686_v56 }
 0x148   : > { %v685_v60 = vadd.f32 %v669_v57, %v585_v58  ;;  %v362_v61 = vpop.permute.xlu1 %361 }
 0x149   : > { %v740_v1 = vmul.f32 0.2, %v708_v59  ;;  %vm724_vm15 = vcmp.gt.f32.partialorder %v708_v59, 0.0  ;;  %v387_v10 = vmul.f32 %v1745_v33, %v362_v61 }
 0x14a   : > { %v707_v0 = vadd.f32 %v1767_v49, %v685_v60 }
 0x14b   : > { %v756_v11 = vsel %vm724_vm15, %v708_v59, %v740_v1 }
 0x14c   : > { %vm723_vm14 = vcmp.gt.f32.partialorder %v707_v0, 0.0  ;;  %v739_v7 = vmul.f32 0.2, %v707_v0 }
 0x14d   : > { %v447_v20 = vpop.permute.xlu1 %446 }
 0x14e   : > { %v755_v9 = vsel %vm723_vm14, %v707_v0, %v739_v7  ;;  %v471_v15 = vmul.f32 %v1748_v36, %v447_v20 }
 0x14f   : > { %1253 = vmatprep.mubr.msk.f32.mxu1 %vm759_vm2, %v755_v9 }
 0x150   : > { %1254 = vmatmul.mubr.msk.f32.gmra.mrb[4].mxu1 %vm759_vm2, %v756_v11  ;;  %v487_v18 = vadd.f32 %v471_v15, %v387_v10 }
 0x152   : > { %v367_v14 = vpop.permute.xlu1 %366 }
 0x153   : > { %v388_v8 = vmul.f32 %v1745_v33, %v367_v14 }
 0x157   : > { %v451_v16 = vpop.permute.xlu1 %450 }
 0x158   : > { %v472_v3 = vmul.f32 %v1748_v36, %v451_v16 }
 0x15a   : > { %v488_v21 = vadd.f32 %v472_v3, %v388_v8 }
 0x15c   : > { %v547_v62 = vpop.permute.xlu1 %546  ;;  %v588_v29 = vadd.f32 %v572_v23, %v488_v21 }
 0x15d   : > { %v571_v17 = vmul.f32 %v1755_v41, %v547_v62 }
 0x15f   : > { %v587_v5 = vadd.f32 %v571_v17, %v487_v18 }
 0x161   : > { %v647_v4 = vpop.permute.xlu1 %646 }
 0x162   : > { %v671_v22 = vmul.f32 %v1757_v42, %v647_v4 }
 0x164   : > { %v687_v24 = vadd.f32 %v671_v22, %v587_v5 }
 0x165   : > { %v651_v26 = vpop.permute.xlu1 %650 }
 0x166   : > { %v709_v28 = vadd.f32 %v1767_v49, %v687_v24  ;;  %v672_v36 = vmul.f32 %v1757_v42, %v651_v26 }
 0x168   : > { %v688_v6 = vadd.f32 %v672_v36, %v588_v29  ;;  %vm725_vm0 = vcmp.gt.f32.partialorder %v709_v28, 0.0  ;;  %v741_v31 = vmul.f32 0.2, %v709_v28 }
 0x16a   : > { %v710_v33 = vadd.f32 %v1767_v49, %v688_v6  ;;  %v757_v32 = vsel %vm725_vm0, %v709_v28, %v741_v31 }
 0x16b   : > { %1256 = vmatprep.mubr.msk.f32.mxu1 %vm759_vm2, %v757_v32 }
 0x16c   : > { %vm726_vm1 = vcmp.gt.f32.partialorder %v710_v33, 0.0  ;;  %v742_v34 = vmul.f32 0.2, %v710_v33 }
 0x16e   : > { %v758_v35 = vsel %vm726_vm1, %v710_v33, %v742_v34 }
 0x16f   : > { %1257 = vmatmul.mubr.msk.f32.gmra.mrb[6].mxu1 %vm759_vm2, %v758_v35  ;;  %vm993_vm2 = vcmask 516096  }
 0x1c5   : > { %v1237_v41 = vpop.f32.mrb[0].mxu0 }
 0x1c6   : > { %v956_v37 = vsel %vm954_vm3, %v1237_v41, 0.0  ;;  %v997_v2 = vmul.f32 %v1237_v41, %v1237_v41  ;;  %v874_v38 = vpop.f32.mrb[1].mxu0 }
 0x1c7   : > { %v955_v42 = vsel %vm954_vm3, %v874_v38, 0.0  ;;  %v996_v27 = vmul.f32 %v874_v38, %v874_v38 }
 0x1c8   : > { %v1013_v39 = vsel %vm954_vm3, %v997_v2, 0.0  ;;  %v957_v49 = vadd.f32 %v956_v37, %v955_v42 }
 0x1c9   : > { %v1012_v30 = vsel %vm954_vm3, %v996_v27, 0.0  ;;  %v1240_v13 = vpop.f32.mrb[2].mxu0 }
 0x1ca   : > { %v1014_v40 = vadd.f32 %v1013_v39, %v1012_v30  ;;  %v884_v43 = vpop.f32.mrb[3].mxu0  ;;  %v999_v44 = vmul.f32 %v1240_v13, %v1240_v13  ;;  %v960_v46 = vsel %vm954_vm3, %v1240_v13, 0.0 }
 0x1cb   : > { %v958_v12 = vsel %vm954_vm3, %v884_v43, 0.0  ;;  %v998_v45 = vmul.f32 %v884_v43, %v884_v43 }
 0x1cc   : > { %v959_v63 = vadd.f32 %v958_v12, %v957_v49  ;;  %v1017_v52 = vsel %vm954_vm3, %v999_v44, 0.0 }
 0x1cd   : > { %v1015_v25 = vsel %vm954_vm3, %v998_v45, 0.0  ;;  %v1243_v47 = vpop.f32.mrb[4].mxu0 }
 0x1ce   : > { %v1016_v48 = vadd.f32 %v1015_v25, %v1014_v40  ;;  %v894_v50 = vpop.f32.mrb[5].mxu0  ;;  %v961_v51 = vadd.f32 %v960_v46, %v959_v63  ;;  %v1001_v53 = vmul.f32 %v1243_v47, %v1243_v47  ;;  %v964_v58 = vsel %vm954_vm3, %v1243_v47, 0.0 }
 0x1cf   : > { %v962_v54 = vsel %vm954_vm3, %v894_v50, 0.0  ;;  %v1000_v55 = vmul.f32 %v894_v50, %v894_v50 }
 0x1d0   : > { %v963_v56 = vadd.f32 %v962_v54, %v961_v51  ;;  %v1018_v57 = vadd.f32 %v1017_v52, %v1016_v48  ;;  %v1021_v0 = vsel %vm954_vm3, %v1001_v53, 0.0 }
 0x1d1   : > { %v1019_v59 = vsel %vm954_vm3, %v1000_v55, 0.0 }
 0x1d2   : > { %v1020_v60 = vadd.f32 %v1019_v59, %v1018_v57  ;;  %v965_v61 = vadd.f32 %v964_v58, %v963_v56 }
 0x1d4   : > { %v1022_v1 = vadd.f32 %v1021_v0, %v1020_v60 }
 0x1d8   : > { %v1246_v7 = vpop.f32.mrb[6].mxu0 }
 0x1d9   : > { %v904_v20 = vpop.f32.mrb[7].mxu0  ;;  %v1003_v9 = vmul.f32 %v1246_v7, %v1246_v7  ;;  %v968_v15 = vsel %vm954_vm3, %v1246_v7, 0.0 }
 0x1da   : > { %v966_v11 = vsel %vm954_vm3, %v904_v20, 0.0  ;;  %v1002_v14 = vmul.f32 %v904_v20, %v904_v20 }
 0x1db   : > { %v967_v16 = vadd.f32 %v966_v11, %v965_v61  ;;  %v1025_v17 = vsel %vm954_vm3, %v1003_v9, 0.0 }
 0x1dc   : > { %v1023_v62 = vsel %vm954_vm3, %v1002_v14, 0.0 }
 0x1dd   : > { %v969_v10 = vadd.f32 %v968_v15, %v967_v16  ;;  %v1024_v3 = vadd.f32 %v1023_v62, %v1022_v1  ;;  %v953_v16 = vld [vmem:[%s1641_s26] sm:$0x1] }
 0x1df   : > { %v1026_v18 = vadd.f32 %v1025_v17, %v1024_v3 }
 0x1f1   : > { %v1249_v8 = vpop.f32.mrb[0].mxu1 }
 0x1f2   : > { %v914_v19 = vpop.f32.mrb[1].mxu1  ;;  %v1005_v4 = vmul.f32 %v1249_v8, %v1249_v8  ;;  %v972_v23 = vsel %vm954_vm3, %v1249_v8, 0.0 }
 0x1f3   : > { %v970_v21 = vsel %vm954_vm3, %v914_v19, 0.0  ;;  %v1004_v5 = vmul.f32 %v914_v19, %v914_v19 }
 0x1f4   : > { %v971_v22 = vadd.f32 %v970_v21, %v969_v10  ;;  %v1029_v29 = vsel %vm954_vm3, %v1005_v4, 0.0  ;;  %v995_v10 = vld [vmem:[%s1644_s27] sm:$0x1] }
 0x1f5   : > { %v1027_v24 = vsel %vm954_vm3, %v1004_v5, 0.0 }
 0x1f6   : > { %v1028_v26 = vadd.f32 %v1027_v24, %v1026_v18  ;;  %v973_v28 = vadd.f32 %v972_v23, %v971_v22 }
 0x1f8   : > { %v1030_v36 = vadd.f32 %v1029_v29, %v1028_v26 }
 0x20a   : > { %v1252_v6 = vpop.f32.mrb[2].mxu1 }
 0x20b   : > { %v924_v31 = vpop.f32.mrb[3].mxu1  ;;  %v1007_v33 = vmul.f32 %v1252_v6, %v1252_v6  ;;  %v976_v41 = vsel %vm954_vm3, %v1252_v6, 0.0 }
 0x20c   : > { %v974_v32 = vsel %vm954_vm3, %v924_v31, 0.0  ;;  %v1006_v34 = vmul.f32 %v924_v31, %v924_v31 }
 0x20d   : > { %v975_v35 = vadd.f32 %v974_v32, %v973_v28  ;;  %v1033_v42 = vsel %vm954_vm3, %v1007_v33, 0.0 }
 0x20e   : > { %v1031_v37 = vsel %vm954_vm3, %v1006_v34, 0.0 }
 0x20f   : > { %v1032_v2 = vadd.f32 %v1031_v37, %v1030_v36  ;;  %v977_v38 = vadd.f32 %v976_v41, %v975_v35 }
 0x211   : > { %v1034_v27 = vadd.f32 %v1033_v42, %v1032_v2 }
 0x223   : > { %v1255_v39 = vpop.f32.mrb[4].mxu1 }
 0x224   : > { %v934_v49 = vpop.f32.mrb[5].mxu1  ;;  %v1009_v30 = vmul.f32 %v1255_v39, %v1255_v39  ;;  %v980_v44 = vsel %vm954_vm3, %v1255_v39, 0.0 }
 0x225   : > { %v978_v13 = vsel %vm954_vm3, %v934_v49, 0.0  ;;  %v1008_v40 = vmul.f32 %v934_v49, %v934_v49 }
 0x226   : > { %v979_v43 = vadd.f32 %v978_v13, %v977_v38  ;;  %v1037_v46 = vsel %vm954_vm3, %v1009_v30, 0.0 }
 0x227   : > { %v1035_v12 = vsel %vm954_vm3, %v1008_v40, 0.0 }
 0x228   : > { %v1036_v45 = vadd.f32 %v1035_v12, %v1034_v27  ;;  %v981_v63 = vadd.f32 %v980_v44, %v979_v43 }
 0x22a   : > { %v1038_v25 = vadd.f32 %v1037_v46, %v1036_v45 }
 0x242   : > { %v1258_v47 = vpop.f32.mrb[6].mxu1 }
 0x243   : > { %v944_v48 = vpop.f32.mrb[7].mxu1  ;;  %v1011_v50 = vmul.f32 %v1258_v47, %v1258_v47  ;;  %v984_v54 = vsel %vm954_vm3, %v1258_v47, 0.0 }
 0x244   : > { %v982_v51 = vsel %vm954_vm3, %v944_v48, 0.0  ;;  %v1010_v52 = vmul.f32 %v944_v48, %v944_v48 }
 0x245   : > { %v983_v53 = vadd.f32 %v982_v51, %v981_v63  ;;  %v1041_v58 = vsel %vm954_vm3, %v1011_v50, 0.0 }
 0x246   : > { %v1039_v55 = vsel %vm954_vm3, %v1010_v52, 0.0 }
 0x247   : > { %v985_v56 = vadd.f32 %v984_v54, %v983_v53  ;;  %v1040_v57 = vadd.f32 %v1039_v55, %v1038_v25 }
 0x249   : > { %v986_v59 = vrot.slane %v985_v56, 4  ;;  %v1042_v60 = vadd.f32 %v1041_v58, %v1040_v57 }
 0x24b   : > { %v987_v61 = vadd.f32 %v986_v59, %v985_v56  ;;  %v1043_v0 = vrot.slane %v1042_v60, 4 }
 0x24d   : > { %v988_v1 = vrot.slane %v987_v61, 2  ;;  %v1044_v7 = vadd.f32 %v1043_v0, %v1042_v60 }
 0x24f   : > { %v989_v20 = vadd.f32 %v988_v1, %v987_v61  ;;  %v1045_v9 = vrot.slane %v1044_v7, 2 }
 0x251   : > { %v990_v11 = vrot.slane %v989_v20, 1  ;;  %v1046_v14 = vadd.f32 %v1045_v9, %v1044_v7 }
 0x253   : > { %v991_v15 = vadd.f32 %v990_v11, %v989_v20  ;;  %v1047_v62 = vrot.slane %v1046_v14, 1 }
 0x255   : > { %v992_v3 = vadd.f32 %v991_v15, %v953_v16  ;;  %v1048_v17 = vadd.f32 %v1047_v62, %v1046_v14 }
 0x257   : > { %994 = vst.msk [vmem:[%s1641_s26] sm:$0x1] %vm993_vm2, %v992_v3  ;;  %v1049_v18 = vadd.f32 %v1048_v17, %v995_v10 }
 0x258   : > { %1409 = shalt.err (!%p1406_p7)
}
 0x259   : > { %s1410_s26 = scalar_lea.hbm %s1951_s15, 16  ;;  %s1414_s16 = scalar_lea.hbm %s2042_s4, 32 }
 0x25a   : > { %p1411_p8 = scmp.ne.s32.totalorder %s1951_s15, %s1410_s26  ;;  %p1415_p12 = scmp.lt.u32.totalorder %s1951_s15, %s2042_s4 }
 0x25b   : > { %p1416_p13 = scmp.lt.u32.totalorder %s1414_s16, %s1410_s26  ;;  %p1418_p1 = scmp.lt.u32.totalorder %s1410_s26, %s1951_s15 }
 0x25c   : > { %p1412_p10 = pnand %p1411_p8, %p1610_p3 }
 0x25d   : > { %p1417_p0 = por %p1416_p13, %p1415_p12 }
 0x25e   : > { %p1413_p11 = pneg %p1412_p10 }
 0x25f   : > { %p1419_p2 = por %p1418_p1, %p1417_p0 }
 0x261   : > { %p1420_p4 = pnand %p1419_p2, %p1413_p11 }
 0x263   : > { %1423 = shalt.err (!%p1420_p4)
}
 0x264   : > { %1271 = dma.vmem_to_hbm [thread:$0]  (%p1610_p3), %s1953_s11, 16, %s1951_s15, %s1052_s7   ;;  %1050 = vst.msk [vmem:[%s1644_s27] sm:$0x1] %vm993_vm2, %v1049_v18 }
 0x265   : > { %s1056_s0 = scalar_lea.sflag [#allocation5], %s1631_s10  ;;  %s1424_s8 = scalar_lea.vmem %s1962_s12, 16 }
 0x266   : > { %p1425_p5 = scmp.ne.s32.totalorder %s1962_s12, %s1424_s8  ;;  %s1530_s26 = smov [#allocation4]  }
 0x267   : > { %s1428_s17 = sshll.u32 %s1530_s26, 4  ;;  %s1429_s17 = int_to_ptr.vmem [resolvable:$false] %s1428_s17 }
 0x268   : > { %p1426_p6 = pnand %p1425_p5, %p1610_p3  ;;  %s1430_s22 = scalar_lea.vmem %s1429_s17, 32 }
 0x269   : > { %p1431_p8 = scmp.lt.s32.totalorder %s1962_s12, %s1429_s17  ;;  %p1432_p10 = scmp.lt.s32.totalorder %s1430_s22, %s1424_s8 }
 0x26a   : > { %p1427_p7 = pneg %p1426_p6 }
 0x26b   : > { %p1433_p11 = por %p1432_p10, %p1431_p8 }
 0x26d   : > { %p1434_p12 = pnand %p1433_p11, %p1427_p7 }
 0x26f   : > { %1437 = shalt.err (!%p1434_p12)
}
 0x270   : > { %s1438_s10 = scalar_lea.hbm %s1960_s21, 16  ;;  %s1442_s15 = scalar_lea.hbm %s2043_s5, 32 }
 0x271   : > { %p1439_p13 = scmp.ne.s32.totalorder %s1960_s21, %s1438_s10  ;;  %p1443_p2 = scmp.lt.u32.totalorder %s1960_s21, %s2043_s5 }
 0x272   : > { %p1444_p4 = scmp.lt.u32.totalorder %s1442_s15, %s1438_s10  ;;  %p1446_p6 = scmp.lt.u32.totalorder %s1438_s10, %s1960_s21 }
 0x273   : > { %p1440_p0 = pnand %p1439_p13, %p1610_p3 }
 0x274   : > { %p1445_p5 = por %p1444_p4, %p1443_p2 }
 0x275   : > { %p1441_p1 = pneg %p1440_p0 }
 0x276   : > { %p1447_p7 = por %p1446_p6, %p1445_p5 }
 0x278   : > { %p1448_p8 = pnand %p1447_p7, %p1441_p1 }
 0x27a   : > { %1451 = shalt.err (!%p1448_p8)
}
 0x27b   : > { %1272 = dma.vmem_to_hbm [thread:$0]  (%p1610_p3), %s1962_s12, 16, %s1960_s21, %s1056_s0  }
 0x27c PF: > { %p1282_p10 = scmp.ge.s32.totalorder %s1522_s25, 2  ;;  %s1093_s13 = sand.u32 1, %s1494_s18  }
 0x27d   : > { %s1094_s14 = scalar_lea.sflag [#allocation3], %s1093_s13 }
 0x27e   : > { %p1276_p11 = pnand %p1282_p10, %p1620_p9 }
 0x280   : > { %1485 = dma.done.wait (!%p1276_p11), %s1094_s14, 16  }
 0x281   : > { %1487 = vsyncadd (!%p1276_p11), %s1094_s14, 4294967280  ;;  %s1102_s8 = scalar_lea.sflag [#allocation5], %s1093_s13 }
 0x282   : > { %1489 = dma.done.wait (!%p1276_p11), %s1102_s8, 16  }
 0x283   : > { %1491 = vsyncadd (!%p1276_p11), %s1102_s8, 4294967280  ;;  %s22_s25 = sadd.s32 1, %s1522_s25   ;;  %s2048_s18 = smov %s1498_s19 }
 0x284   : > { %p19_p12 = scmp.ge.s32.totalorder %s22_s25, 6   ;;  %s2049_s19 = smov %s1502_s20 }
 0x285   : > { %s2050_s20 = smov %s1628_s9  ;;  %s2051_s21 = smov %s1514_s23 }
 0x286   : > { %s2052_s22 = smov %s1518_s24  ;;  %s2053_s23 = smov %s2056_s28 }
 0x287   : > { %s2054_s24 = smov %s2060_s29  ;;  %21 = sbr.rel (!%p19_p12) target bundleno = 9 (0x9), region = 92 }
 0x28e   :  { %1106 = vsyncpa [#allocation3], 1 }
 0x28f   :  { %1108 = vsyncpa [#allocation3 + $0x1], 1 }
 0x290   :  { %1109 = vsyncpa [#allocation5], 1 }
 0x291   :  { %1111 = vsyncpa [#allocation5 + $0x1], 1 }

</bundles_post_ra>
